<compile_context>
chip_gen: v6e
topology: v6e:2x2x1
jax: 0.10.0
libtpu: 0.0.40
codegen_flags: <defaults>
</compile_context>

<pallas_src>
import jax
import jax.numpy as jnp
from jax.experimental import pallas as pl
from jax.experimental.pallas import tpu as pltpu

EPS = 1e-5
_VMEM_LIMIT = 32 * 1024 * 1024  # explicit scoped-VMEM cap, safe on v5e/v6e/v7x

# bf16 MXU inputs (f32 accumulate) are ~3-4x faster on v6e/v7x but perturb
# numerics; keep exact f32 by default so the check against the f32 reference
# is tight.  Flip for production channel counts.
USE_BF16_MATMUL = False


def _mm(w, h):
    """1x1 conv as channel contraction: (C_out, C_in) @ (C_in, tT) -> f32."""
    if USE_BF16_MATMUL:
        w = w.astype(jnp.bfloat16)
        h = h.astype(jnp.bfloat16)
    return jnp.dot(w, h, preferred_element_type=jnp.float32)


def _net_from_x(x, a0, b0, w0, c0):
    """net = fc_0(relu(bn_0(x))) with BN folded to a*x + b."""
    h = jnp.maximum(x * a0 + b0, 0.0)
    return _mm(w0, h) + c0


def _dx_from_net(net, a1, b1, w1, c1):
    """dx = fc_1(relu(bn_1(net))) with BN folded to a*net + b."""
    h1 = jnp.maximum(net * a1 + b1, 0.0)
    return _mm(w1, h1) + c1


def _lane_mask_fn(valid_T, tile_T, masked):
    """Zero lanes past the true T extent (only needed for a partial last tile)."""
    if not masked:
        return lambda v: v

    def mask(v):
        t0 = pl.program_id(1) * tile_T
        lane = jax.lax.broadcasted_iota(jnp.int32, v.shape, 1)
        return jnp.where(t0 + lane < valid_T, v, 0.0)

    return mask


# ---------------------------------------------------------------------------
# Pass 1: per-channel sum / sumsq of x (BN_0 batch statistics).
# ---------------------------------------------------------------------------
def _make_x_stats_kernel(valid_T, tile_T, masked):
    mask = _lane_mask_fn(valid_T, tile_T, masked)

    def kernel(x_ref, s_ref, ss_ref):
        @pl.when(pl.program_id(1) == 0)
        def _():
            s_ref[...] = jnp.zeros_like(s_ref)
            ss_ref[...] = jnp.zeros_like(ss_ref)

        x = mask(x_ref[0])                                    # (C_in, tT)
        s_ref[...] += jnp.sum(x, axis=1, keepdims=True)[None]
        ss_ref[...] += jnp.sum(x * x, axis=1, keepdims=True)[None]

    return kernel


# ---------------------------------------------------------------------------
# Pass 2: net = fc_0(relu(bn_0(x)))  +  per-channel sum / sumsq of net.
# `write_net=False` keeps net in VMEM only (recompute mode, saves HBM traffic).
# ---------------------------------------------------------------------------
def _make_fc0_kernel(valid_T, tile_T, masked, write_net):
    mask = _lane_mask_fn(valid_T, tile_T, masked)

    def body(x_ref, a0_ref, b0_ref, w0_ref, c0_ref, s_ref, ss_ref, net_ref):
        @pl.when(pl.program_id(1) == 0)
        def _():
            s_ref[...] = jnp.zeros_like(s_ref)
            ss_ref[...] = jnp.zeros_like(ss_ref)

        net = _net_from_x(x_ref[0], a0_ref[...], b0_ref[...],
                          w0_ref[...], c0_ref[...])            # (C_h, tT)
        if net_ref is not None:
            net_ref[0] = net                                   # padded lanes clipped
        net_m = mask(net)
        s_ref[...] += jnp.sum(net_m, axis=1, keepdims=True)[None]
        ss_ref[...] += jnp.sum(net_m * net_m, axis=1, keepdims=True)[None]

    if write_net:
        def kernel(x_ref, a0, b0, w0, c0, net_ref, s_ref, ss_ref):
            body(x_ref, a0, b0, w0, c0, s_ref, ss_ref, net_ref)
    else:
        def kernel(x_ref, a0, b0, w0, c0, s_ref, ss_ref):
            body(x_ref, a0, b0, w0, c0, s_ref, ss_ref, None)
    return kernel


# ---------------------------------------------------------------------------
# Pass 3: out = shortcut(x) + fc_1(relu(bn_1(net))).
#   _mat_*: net was materialized in HBM by pass 2 and is re-read.
#   _rec_*: net is recomputed from x (one extra fc_0 matmul, no net HBM I/O).
# ---------------------------------------------------------------------------
def _fc1_mat_id(x_ref, net_ref, a1, b1, w1, c1, o_ref):
    dx = _dx_from_net(net_ref[0], a1[...], b1[...], w1[...], c1[...])
    o_ref[0] = x_ref[0] + dx                                   # identity: no MXU


def _fc1_mat_proj(x_ref, net_ref, a1, b1, w1, c1, ws, o_ref):
    dx = _dx_from_net(net_ref[0], a1[...], b1[...], w1[...], c1[...])
    o_ref[0] = _mm(ws[...], x_ref[0]) + dx                     # bias-free 1x1 conv


def _fc1_rec_id(x_ref, a0, b0, w0, c0, a1, b1, w1, c1, o_ref):
    net = _net_from_x(x_ref[0], a0[...], b0[...], w0[...], c0[...])
    dx = _dx_from_net(net, a1[...], b1[...], w1[...], c1[...])
    o_ref[0] = x_ref[0] + dx


def _fc1_rec_proj(x_ref, a0, b0, w0, c0, a1, b1, w1, c1, ws, o_ref):
    net = _net_from_x(x_ref[0], a0[...], b0[...], w0[...], c0[...])
    dx = _dx_from_net(net, a1[...], b1[...], w1[...], c1[...])
    o_ref[0] = _mm(ws[...], x_ref[0]) + dx


# ---------------------------------------------------------------------------
# Wrapper helpers
# ---------------------------------------------------------------------------
def _choose_t_tile(T, max_tile):
    """Prefer the largest 128-multiple tile that divides T exactly (no masking);
    fall back to masked partial-last-tile tiling for irregular T."""
    if T <= max_tile:
        return T, False
    top = max(128, max_tile - (max_tile % 128))
    for cand in range(top, 127, -128):
        if T % cand == 0:
            return cand, False
    return top, True


def _replicated(shape):
    zeros = (0,) * len(shape)
    return pl.BlockSpec(shape, lambda b, t, _z=zeros: _z)


def _fold_bn(s_bc, ss_bc, count, gamma, beta):
    """Fold training-mode BN into per-channel scale/shift: bn(x) == a*x + b."""
    s = jnp.sum(s_bc, axis=(0, 2))                             # (C,)
    ss = jnp.sum(ss_bc, axis=(0, 2))                           # (C,)
    mean = s / count
    var = jnp.maximum(ss / count - mean * mean, 0.0)           # biased variance
    a = gamma * jax.lax.rsqrt(var + EPS)
    b = beta - mean * a
    return a[:, None].astype(jnp.float32), b[:, None].astype(jnp.float32)


def resnet_block_conv1d(x, params, *, max_t_tile=512, recompute_net=None):
    """x: (B, C_in, T) float32 in PyTorch Conv1d/BatchNorm1d (NCT) layout."""
    B, C_in, T = x.shape
    C_h = params["w0"].shape[0]
    C_out = params["w1"].shape[0]
    has_proj = "ws" in params
    tT, masked = _choose_t_tile(T, max_t_tile)
    nT = pl.cdiv(T, tT)
    grid = (B, nT)
    count = jnp.float32(B * T)

    if recompute_net is None:
        # Recompute net in pass 3 (saves 8*B*C_h*T HBM bytes for one extra fc_0
        # matmul) while the block is still memory-bound on the MXU roofline.
        recompute_net = C_in <= 256

    x_spec = pl.BlockSpec((1, C_in, tT), lambda b, t: (b, 0, t))
    net_spec = pl.BlockSpec((1, C_h, tT), lambda b, t: (b, 0, t))
    out_spec = pl.BlockSpec((1, C_out, tT), lambda b, t: (b, 0, t))
    stat_spec = lambda C: pl.BlockSpec((1, C, 1), lambda b, t: (b, 0, 0))

    reduce_params = pltpu.CompilerParams(
        dimension_semantics=("parallel", "arbitrary"),
        vmem_limit_bytes=_VMEM_LIMIT)
    parallel_params = pltpu.CompilerParams(
        dimension_semantics=("parallel", "parallel"),
        vmem_limit_bytes=_VMEM_LIMIT)

    xbytes = 4 * B * C_in * T
    netbytes = 4 * B * C_h * T
    outbytes = 4 * B * C_out * T
    fc0_flops = 2 * B * T * C_in * C_h
    fc1_flops = 2 * B * T * C_h * C_out
    sc_flops = 2 * B * T * C_in * C_out if has_proj else 0

    # --- pass 1: BN_0 batch statistics of x ---------------------------------
    s0, ss0 = pl.pallas_call(
        _make_x_stats_kernel(T, tT, masked),
        grid=grid,
        in_specs=[x_spec],
        out_specs=(stat_spec(C_in), stat_spec(C_in)),
        out_shape=(jax.ShapeDtypeStruct((B, C_in, 1), jnp.float32),
                   jax.ShapeDtypeStruct((B, C_in, 1), jnp.float32)),
        compiler_params=reduce_params,
        cost_estimate=pl.CostEstimate(flops=3 * B * C_in * T,
                                      transcendentals=0,
                                      bytes_accessed=xbytes),
    )(x)
    a0, b0 = _fold_bn(s0, ss0, count, params["g0"], params["be0"])

    # --- pass 2: BN_1 statistics of net (optionally materializing net) ------
    w0 = params["w0"]
    c0 = params["b0"][:, None]
    fc0_kernel = _make_fc0_kernel(T, tT, masked, write_net=not recompute_net)
    in_specs2 = [x_spec, _replicated(a0.shape), _replicated(b0.shape),
                 _replicated(w0.shape), _replicated(c0.shape)]
    if recompute_net:
        out_specs2 = (stat_spec(C_h), stat_spec(C_h))
        out_shapes2 = (jax.ShapeDtypeStruct((B, C_h, 1), jnp.float32),
                       jax.ShapeDtypeStruct((B, C_h, 1), jnp.float32))
        bytes2 = xbytes
    else:
        out_specs2 = (net_spec, stat_spec(C_h), stat_spec(C_h))
        out_shapes2 = (jax.ShapeDtypeStruct((B, C_h, T), jnp.float32),
                       jax.ShapeDtypeStruct((B, C_h, 1), jnp.float32),
                       jax.ShapeDtypeStruct((B, C_h, 1), jnp.float32))
        bytes2 = xbytes + netbytes
    res2 = pl.pallas_call(
        fc0_kernel,
        grid=grid,
        in_specs=in_specs2,
        out_specs=out_specs2,
        out_shape=out_shapes2,
        compiler_params=reduce_params,
        cost_estimate=pl.CostEstimate(
            flops=fc0_flops + 6 * B * T * (C_in + C_h),
            transcendentals=0,
            bytes_accessed=bytes2),
    )(x, a0, b0, w0, c0)
    if recompute_net:
        s1, ss1 = res2
        net = None
    else:
        net, s1, ss1 = res2
    a1, b1 = _fold_bn(s1, ss1, count, params["g1"], params["be1"])

    # --- pass 3: out = shortcut(x) + fc_1(relu(bn_1(net))) ------------------
    w1 = params["w1"]
    c1 = params["b1"][:, None]
    if recompute_net:
        kernel3 = _fc1_rec_proj if has_proj else _fc1_rec_id
        in_specs3 = [x_spec,
                     _replicated(a0.shape), _replicated(b0.shape),
                     _replicated(w0.shape), _replicated(c0.shape),
                     _replicated(a1.shape), _replicated(b1.shape),
                     _replicated(w1.shape), _replicated(c1.shape)]
        args3 = [x, a0, b0, w0, c0, a1, b1, w1, c1]
        flops3 = fc0_flops + fc1_flops + sc_flops + 8 * B * T * (C_in + C_h)
        bytes3 = xbytes + outbytes
    else:
        kernel3 = _fc1_mat_proj if has_proj else _fc1_mat_id
        in_specs3 = [x_spec, net_spec,
                     _replicated(a1.shape), _replicated(b1.shape),
                     _replicated(w1.shape), _replicated(c1.shape)]
        args3 = [x, net, a1, b1, w1, c1]
        flops3 = fc1_flops + sc_flops + 4 * B * T * (C_h + C_out)
        bytes3 = xbytes + netbytes + outbytes
    if has_proj:
        in_specs3.append(_replicated(params["ws"].shape))
        args3.append(params["ws"])

    out = pl.pallas_call(
        kernel3,
        grid=grid,
        in_specs=in_specs3,
        out_specs=out_spec,
        out_shape=jax.ShapeDtypeStruct((B, C_out, T), jnp.float32),
        compiler_params=parallel_params,
        cost_estimate=pl.CostEstimate(flops=flops3, transcendentals=0,
                                      bytes_accessed=bytes3),
    )(*args3)
    return out


# ---------------------------------------------------------------------------
# Pure-JAX reference (mirrors the PyTorch forward, training-mode BatchNorm1d)
# ---------------------------------------------------------------------------
def _reference(x, params):
    def bn(v, g, b):
        mean = jnp.mean(v, axis=(0, 2), keepdims=True)
        var = jnp.mean((v - mean) ** 2, axis=(0, 2), keepdims=True)
        return ((v - mean) * jax.lax.rsqrt(var + EPS) * g[None, :, None]
                + b[None, :, None])

    def conv1x1(v, w, b=None):                 # w: (C_out, C_in)
        y = jnp.einsum("oc,bct->bot", w, v)
        if b is not None:
            y = y + b[None, :, None]
        return y

    h = jnp.maximum(bn(x, params["g0"], params["be0"]), 0.0)
    net = conv1x1(h, params["w0"], params["b0"])
    h1 = jnp.maximum(bn(net, params["g1"], params["be1"]), 0.0)
    dx = conv1x1(h1, params["w1"], params["b1"])
    x_s = conv1x1(x, params["ws"]) if "ws" in params else x
    return x_s + dx


def make_params(key, size_in, size_h, size_out, zero_init_fc1=True):
    k0, k1, k2, k3, k4 = jax.random.split(key, 5)
    params = {
        # BatchNorm1d default init: weight=1, bias=0
        "g0": jnp.ones((size_in,), jnp.float32),
        "be0": jnp.zeros((size_in,), jnp.float32),
        "g1": jnp.ones((size_h,), jnp.float32),
        "be1": jnp.zeros((size_h,), jnp.float32),
        # Conv1d weights kept in PyTorch (C_out, C_in) layout
        "w0": 0.1 * jax.random.normal(k0, (size_h, size_in), jnp.float32),
        "b0": 0.1 * jax.random.normal(k1, (size_h,), jnp.float32),
        "b1": 0.1 * jax.random.normal(k2, (size_out,), jnp.float32),
    }
    if zero_init_fc1:
        params["w1"] = jnp.zeros((size_out, size_h), jnp.float32)  # zeros_ init
    else:
        params["w1"] = 0.1 * jax.random.normal(k4, (size_out, size_h), jnp.float32)
    if size_in != size_out:
        params["ws"] = 0.1 * jax.random.normal(k3, (size_out, size_in), jnp.float32)
    return params


if __name__ == "__main__":
    key = jax.random.PRNGKey(0)

    configs = [
        # (B, size_in, size_h, size_out, T, max_t_tile, zero_fc1, recompute_net)
        (2, 4, 8, 6, 16, 512, True, None),     # proj shortcut, module init, recompute (auto)
        (2, 4, 8, 4, 16, 512, False, None),    # identity shortcut, recompute (auto)
        (2, 4, 8, 6, 256, 128, False, False),  # multi-tile T, materialized net, proj
        (2, 4, 8, 4, 200, 128, False, False),  # masked partial last tile, materialized, id
        (2, 4, 8, 6, 200, 128, False, None),   # masked partial last tile, recompute, proj
    ]
    for (B, c_in, c_h, c_out, T, tile, zero_fc1, rec) in configs:
        key, kx, kp = jax.random.split(key, 3)
        x = jax.random.normal(kx, (B, c_in, T), jnp.float32)
        params = make_params(kp, c_in, c_h, c_out, zero_init_fc1=zero_fc1)

        out = jax.block_until_ready(
            resnet_block_conv1d(x, params, max_t_tile=tile, recompute_net=rec))
        ref = _reference(x, params)
        assert out.shape == (B, c_out, T)
        assert jnp.allclose(out, ref, rtol=1e-4, atol=1e-4), (
            f"mismatch vs JAX reference for config "
            f"{(B, c_in, c_h, c_out, T, tile, zero_fc1, rec)}")

    print("KERNEL_OK")
</pallas_src>

<mosaic_0001>
module attributes {stable_mosaic.version = 11 : i64} {
  func.func @kernel(%arg0: i32, %arg1: i32, %arg2: memref<1x4x16xf32, #tpu.memory_space<vmem>>, %arg3: memref<1x4x1xf32, #tpu.memory_space<vmem>>, %arg4: memref<1x4x1xf32, #tpu.memory_space<vmem>>) attributes {dimension_semantics = [#tpu.dimension_semantics<parallel>, #tpu.dimension_semantics<arbitrary>], iteration_bounds = array<i64: 2, 1>, scalar_prefetch = 0 : i64, scratch_operands = 0 : i64, tpu.core_type = #tpu.core_type<tc>, window_params = [{transform_indices = @transform_0, window_bounds = array<i64: 1, 4, 16>}, {transform_indices = @transform_1, window_bounds = array<i64: 1, 4, 1>}, {transform_indices = @transform_2, window_bounds = array<i64: 1, 4, 1>}]} {
    %c0_i32 = arith.constant 0 : i32
    %0 = arith.cmpi eq, %arg1, %c0_i32 : i32
    %1 = arith.extui %0 : i1 to i32
    %c0_i32_0 = arith.constant 0 : i32
    %2 = arith.cmpi ne, %1, %c0_i32_0 : i32
    scf.if %2 {
      %cst_16 = arith.constant 0.000000e+00 : f32
      %18 = vector.broadcast %cst_16 : f32 to vector<1x4x1xf32>
      %c0_17 = arith.constant 0 : index
      %c0_18 = arith.constant 0 : index
      %c0_19 = arith.constant 0 : index
      %19 = vector.load %arg3[%c0_17, %c0_18, %c0_19] : memref<1x4x1xf32, #tpu.memory_space<vmem>>, vector<1x4x1xf32>
      tpu.vector_store %arg3[%c0_17, %c0_18, %c0_19], %18 {strides = array<i32>} : memref<1x4x1xf32, #tpu.memory_space<vmem>>, vector<1x4x1xf32>,
      %cst_20 = arith.constant 0.000000e+00 : f32
      %20 = vector.broadcast %cst_20 : f32 to vector<1x4x1xf32>
      %c0_21 = arith.constant 0 : index
      %c0_22 = arith.constant 0 : index
      %c0_23 = arith.constant 0 : index
      %21 = vector.load %arg4[%c0_21, %c0_22, %c0_23] : memref<1x4x1xf32, #tpu.memory_space<vmem>>, vector<1x4x1xf32>
      tpu.vector_store %arg4[%c0_21, %c0_22, %c0_23], %20 {strides = array<i32>} : memref<1x4x1xf32, #tpu.memory_space<vmem>>, vector<1x4x1xf32>,
    } else {
    }
    %c0 = arith.constant 0 : index
    %c0_1 = arith.constant 0 : index
    %c0_2 = arith.constant 0 : index
    %3 = vector.load %arg2[%c0, %c0_1, %c0_2] : memref<1x4x16xf32, #tpu.memory_space<vmem>>, vector<1x4x16xf32>
    %4 = vector.shape_cast %3 : vector<1x4x16xf32> to vector<4x16xf32>
    %c0_3 = arith.constant 0 : index
    %c0_4 = arith.constant 0 : index
    %c0_5 = arith.constant 0 : index
    %5 = vector.load %arg3[%c0_3, %c0_4, %c0_5] : memref<1x4x1xf32, #tpu.memory_space<vmem>>, vector<1x4x1xf32>
    %cst = arith.constant dense<0.000000e+00> : vector<4xf32>
    %6 = vector.multi_reduction <add>, %4, %cst [1] : vector<4x16xf32> to vector<4xf32>
    %7 = vector.shape_cast %6 : vector<4xf32> to vector<4x1xf32>
    %8 = vector.shape_cast %7 : vector<4x1xf32> to vector<1x4x1xf32>
    %9 = arith.addf %5, %8 : vector<1x4x1xf32>
    %c0_6 = arith.constant 0 : index
    %c0_7 = arith.constant 0 : index
    %c0_8 = arith.constant 0 : index
    %10 = vector.load %arg3[%c0_6, %c0_7, %c0_8] : memref<1x4x1xf32, #tpu.memory_space<vmem>>, vector<1x4x1xf32>
    tpu.vector_store %arg3[%c0_6, %c0_7, %c0_8], %9 {strides = array<i32>} : memref<1x4x1xf32, #tpu.memory_space<vmem>>, vector<1x4x1xf32>,
    %c0_9 = arith.constant 0 : index
    %c0_10 = arith.constant 0 : index
    %c0_11 = arith.constant 0 : index
    %11 = vector.load %arg4[%c0_9, %c0_10, %c0_11] : memref<1x4x1xf32, #tpu.memory_space<vmem>>, vector<1x4x1xf32>
    %12 = arith.mulf %4, %4 : vector<4x16xf32>
    %cst_12 = arith.constant dense<0.000000e+00> : vector<4xf32>
    %13 = vector.multi_reduction <add>, %12, %cst_12 [1] : vector<4x16xf32> to vector<4xf32>
    %14 = vector.shape_cast %13 : vector<4xf32> to vector<4x1xf32>
    %15 = vector.shape_cast %14 : vector<4x1xf32> to vector<1x4x1xf32>
    %16 = arith.addf %11, %15 : vector<1x4x1xf32>
    %c0_13 = arith.constant 0 : index
    %c0_14 = arith.constant 0 : index
    %c0_15 = arith.constant 0 : index
    %17 = vector.load %arg4[%c0_13, %c0_14, %c0_15] : memref<1x4x1xf32, #tpu.memory_space<vmem>>, vector<1x4x1xf32>
    tpu.vector_store %arg4[%c0_13, %c0_14, %c0_15], %16 {strides = array<i32>} : memref<1x4x1xf32, #tpu.memory_space<vmem>>, vector<1x4x1xf32>,
    return
  }
  func.func @transform_0(%arg0: i32, %arg1: i32) -> (i32, i32, i32) {
    %c0_i32 = arith.constant 0 : i32
    %c0_i32_0 = arith.constant 0 : i32
    return %arg0, %c0_i32, %arg1 : i32, i32, i32
  }
  func.func @transform_1(%arg0: i32, %arg1: i32) -> (i32, i32, i32) {
    %c0_i32 = arith.constant 0 : i32
    %c0_i32_0 = arith.constant 0 : i32
    %c0_i32_1 = arith.constant 0 : i32
    return %arg0, %c0_i32, %c0_i32_0 : i32, i32, i32
  }
  func.func @transform_2(%arg0: i32, %arg1: i32) -> (i32, i32, i32) {
    %c0_i32 = arith.constant 0 : i32
    %c0_i32_0 = arith.constant 0 : i32
    %c0_i32_1 = arith.constant 0 : i32
    return %arg0, %c0_i32, %c0_i32_0 : i32, i32, i32
  }
}

</mosaic_0001>

<bundles_post_ra>
// kernel: tpu_custom_call.1
= control target key start
LH: loop header
LB: loop body
LE: loop exit
PB: predicated region body
PF: predicated region fallthrough
CT: control target
= control target key end

     0   :  { %8 = vsyncpa [#allocation3], 0  ;;  %s585_s0 = inlined_call_operand.hbm [shape: f32[2,4,16], index: 0, kind: input, shape index: {}]   ;;  %s586_s1 = inlined_call_operand.vmem [shape: f32[2,4,1], index: 1, kind: output, shape index: {0}]   ;;  %s587_s2 = inlined_call_operand.vmem [shape: f32[2,4,1], index: 2, kind: output, shape index: {1}]  }
   0x1   :  { %10 = vsyncpa [#allocation3 + $0x1], 0  ;;  %s478_s9 = smov 0   ;;  %s480_s10 = smov 0  }
   0x2   :  { %s482_s11 = smov 0   ;;  %s484_s12 = smov 0  }
   0x3   :  { %s486_s13 = smov 0   ;;  %s488_s14 = smov 0  }
   0x4 LB: > { %s313_s15 = sadd.s32 4294967295, %s459_s14   ;;  %s28_s16 = sadd.s32 1, %s455_s13  ;;  %s459_s14 = sphi %s488_s14, %s16_s14   ;;  %s455_s13 = sphi %s486_s13, %s595_s13   ;;  %s451_s12 = sphi %s484_s12, %s594_s12   ;;  %s447_s11 = sphi %s482_s11, %s593_s11   ;;  %s443_s10 = sphi %s480_s10, %s592_s10   ;;  %s439_s9 = sphi %s478_s9, %s591_s9  }
   0x5   : > { %p30_p0 = scmp.ge.s32.totalorder %s28_s16, 2  ;;  %s37_s17 = sadd.s32 1, %s447_s11 }
   0x6   : > { %p44_p1 = scmp.ne.s32.totalorder %s447_s11, %s443_s10  ;;  %p45_p2 = scmp.eq.s32.totalorder %s459_s14, 0 }
   0x7   : > { %s597_s16 = smov (%p30_p0, %s28_s16), 0  ;;  %p50_p4 = scmp.ne.s32.totalorder %s443_s10, %s439_s9 }
   0x8   : > { %p514_p3 = por %p45_p2, %p44_p1  ;;  %s32_s19 = ssub.s32 %s455_s13, %s597_s16 }
   0x9   : > { %p51_p5 = scmp.eq.s32.totalorder %s313_s15, 0  ;;  %p35_p6 = scmp.eq.s32.totalorder %s32_s19, 0 }
   0xa   : > { %p331_p8 = scmp.lt.s32.totalorder %s459_s14, 2  ;;  %s126_s22 = sand.u32 1, %s447_s11  }
   0xb   : > { %p521_p7 = por %p51_p5, %p50_p4  ;;  %s318_s23 = sshll.u32 %s455_s13, 6 }
   0xc   : > { %s527_s21 = scalar_select %p35_p6, %s447_s11, %s37_s17  }
   0xd   : > { %s317_s24 = sshll.u32 %s126_s22, 2  ;;  %s136_s27 = scalar_lea.hbm %s585_s0, %s318_s23 }
   0xe   : > { %s130_s28 = scalar_lea.vmem [#allocation2], %s317_s24  ;;  %p536_p9 = pnand %p331_p8, %p514_p3 }
   0xf   : > { %s138_s29 = sshll.u32 %s130_s28, 4  ;;  %p319_p10 = scmp.ge.s32.totalorder %s459_s14, 1  ;;  %s139_s29 = int_to_ptr.vmem [resolvable:$true] %s138_s29 }
  0x10   : > { %p143_p11 = scmp.lt.s32.totalorder %s459_s14, 3  ;;  %s127_s3 = scalar_lea.sflag [#allocation3], %s126_s22 }
  0x11   : > { %p383_p12 = pneg %p536_p9  ;;  %s394_s4 = scalar_lea.vmem %s139_s29, 64 }
  0x12   : > { %p395_p13 = scmp.ne.s32.totalorder %s139_s29, %s394_s4  ;;  %s461_s5 = smov [#allocation2]  }
  0x13   : > { %s399_s6 = sshll.u32 %s461_s5, 4  ;;  %s400_s6 = int_to_ptr.vmem [resolvable:$false] %s399_s6 }
  0x14   : > { %p397_p0 = pnand %p395_p13, %p383_p12  ;;  %s401_s7 = scalar_lea.vmem %s400_s6, 128 }
  0x15   : > { %p402_p2 = scmp.lt.s32.totalorder %s139_s29, %s400_s6  ;;  %p403_p3 = scmp.lt.s32.totalorder %s401_s7, %s394_s4 }
  0x16   : > { %p398_p1 = pneg %p397_p0 }
  0x17   : > { %p404_p4 = por %p403_p3, %p402_p2 }
  0x19   : > { %p405_p5 = pnand %p404_p4, %p398_p1 }
  0x1b   : > { %408 = shalt.err (!%p405_p5)
}
  0x1c   : > { %330 = dma.hbm_to_vmem [thread:$0]  (!%p536_p9), %s136_s27, 64, %s139_s29, %s127_s3  }
  0x1d   : > { %p144_p6 = pnand %p319_p10, %p143_p11 }
  0x1e   : > { %s149_s8 = sand.u32 (!%p144_p6), 1, %s443_s10  }
  0x1f   : > { %147 = sbr.rel (%p144_p6) target bundleno = 185 (0xb9), region = 24  ;;  %s320_s9 = sshll.u32 (!%p144_p6), %s149_s8, 2 }
  0x20   : > { %s150_s15 = scalar_lea.sflag (!%p144_p6), [#allocation3], %s149_s8  ;;  %s153_s17 = scalar_lea.vmem (!%p144_p6), [#allocation2], %s320_s9 }
  0x24   : > { %434 = dma.done.wait (%p521_p7), %s150_s15, 64  }
  0x25   : > { %436 = vsyncadd (%p521_p7), %s150_s15, 4294967232  ;;  %p177_p8 = scmp.lt.s32.totalorder %s451_s12, 1  ;;  %vm189_vm0 = vcmask 3072   ;;  %vm194_vm1 = vcmask 125952   ;;  %v462_v0 = vmov 0.0  }
  0x26   : > { %v192_v1 = vld [vmem:[%s153_s17] sm:$0xf] }
  0x27   : > { %s599_s12 = smov (!%p177_p8, %s451_s12), 1  ;;  %v195_v2 = vsel %vm194_vm1, %v192_v1, 0.0  ;;  %v202_v3 = vmul.f32 %v192_v1, %v192_v1 }
  0x28   : > { %s321_s18 = sshll.u32 %s599_s12, 2  ;;  %196 = vadd.xlane.f32.xlu0 %v195_v2 }
  0x29   : > { %s180_s23 = scalar_lea.vmem %s586_s1, %s321_s18  ;;  %v203_v4 = vsel %vm194_vm1, %v202_v3, 0.0  ;;  %s184_s25 = scalar_lea.vmem %s587_s2, %s321_s18 }
  0x2a   : > { %190 = vst.msk [vmem:[%s180_s23] sm:$0xf] %vm189_vm0, %v462_v0  ;;  %191 = vst.msk [vmem:[%s184_s25] sm:$0xf] %vm189_vm0, %v462_v0 }
  0x2c   : > { %204 = vadd.xlane.f32.xlu0 %v203_v4 }
  0x31   : > { %v193_v5 = vld [vmem:[%s180_s23] sm:$0xf] }
  0x32   : > { %v201_v8 = vld [vmem:[%s184_s25] sm:$0xf] }
  0xb1   : > { %v197_v6 = vpop.xlane.xlu0 %196 }
  0xb2   : > { %v198_v7 = vadd.f32 %v197_v6, %v193_v5 }
  0xb4   : > { %200 = vst.msk [vmem:[%s180_s23] sm:$0xf] %vm189_vm0, %v198_v7 }
  0xb5   : > { %v205_v9 = vpop.xlane.xlu0 %204 }
  0xb6   : > { %v206_v10 = vadd.f32 %v205_v9, %v201_v8 }
  0xb8   : > { %207 = vst.msk [vmem:[%s184_s25] sm:$0xf] %vm189_vm0, %v206_v10 }
  0xb9 PF: > { %s16_s14 = sadd.s32 1, %s459_s14   ;;  %s591_s9 = smov %s443_s10 }
  0xba   : > { %p13_p7 = scmp.ge.s32.totalorder %s16_s14, 4   ;;  %s592_s10 = smov %s447_s11 }
  0xbb   : > { %s593_s11 = smov %s527_s21  ;;  %s594_s12 = smov %s455_s13 }
  0xbc   : > { %s595_s13 = smov %s597_s16  ;;  %15 = sbr.rel (!%p13_p7) target bundleno = 4 (0x4), region = 80 }
  0xc1   :  { %241 = vsyncpa [#allocation3], 1 }
  0xc2   :  { %243 = vsyncpa [#allocation3 + $0x1], 1 }

</bundles_post_ra>
